<compile_context>
chip_gen: v7x
topology: tpu7x:2x2x1
jax: 0.10.0
libtpu: 0.0.40
codegen_flags: <defaults>
</compile_context>

<pallas_src>
import jax
import jax.numpy as jnp
from jax.experimental import pallas as pl
from jax.experimental.pallas import tpu as pltpu


def mm_add_kernel(a_ref, b_ref, res_ref, o_ref, acc_ref):
    """acc += a @ b over the K grid axis; on the last K step store acc + res."""
    k = pl.program_id(2)

    @pl.when(k == 0)
    def _init():
        acc_ref[...] = jnp.zeros_like(acc_ref)

    a = a_ref[...]          # single hoisted load of the LHS tile (bf16)
    b = b_ref[...]
    acc_ref[...] += jnp.dot(a, b, preferred_element_type=jnp.float32)

    @pl.when(k == pl.num_programs(2) - 1)
    def _finalize():
        # residual add in f32 on the VPU, one lane-dense store
        o_ref[...] = (acc_ref[...] + res_ref[...].astype(jnp.float32)).astype(o_ref.dtype)


def _tile(dim, pref, align):
    """Largest tile <= pref that divides dim and is a multiple of `align` (or dim itself)."""
    if dim <= pref:
        return dim
    t = (pref // align) * align
    while dim % t:
        t -= align
    return t


def mm_add(inp, x1, *, tm=256, tn=256, tk=256, operand_dtype=jnp.bfloat16):
    M, K = inp.shape
    K2, N = x1.shape
    assert K == K2
    assert N == K, "v1 + inp requires the matmul output width to match inp's width"
    assert M % 8 == 0 and K % 128 == 0 and N % 128 == 0, (
        "unaligned shapes should go through the XLA fallback in model_forward")

    tm = _tile(M, tm, 8)
    tn = _tile(N, tn, 128)
    tk = _tile(K, tk, 128)

    # bf16 operands for the MXU; accumulation and the residual add stay in f32.
    a = inp.astype(operand_dtype)
    b = x1.astype(operand_dtype)

    grid = (M // tm, N // tn, K // tk)   # reduction axis last

    itemsize_out = jnp.dtype(inp.dtype).itemsize
    cost = pl.CostEstimate(
        flops=2 * M * N * K,
        transcendentals=0,
        bytes_accessed=(a.size * a.dtype.itemsize
                        + b.size * b.dtype.itemsize
                        + inp.size * inp.dtype.itemsize
                        + M * N * itemsize_out),
    )

    return pl.pallas_call(
        mm_add_kernel,
        out_shape=jax.ShapeDtypeStruct((M, N), inp.dtype),
        grid_spec=pltpu.PrefetchScalarGridSpec(
            num_scalar_prefetch=0,
            grid=grid,
            in_specs=[
                pl.BlockSpec((tm, tk), lambda i, j, k: (i, k)),   # LHS tile (bf16)
                pl.BlockSpec((tk, tn), lambda i, j, k: (k, j)),   # RHS tile (bf16)
                pl.BlockSpec((tm, tn), lambda i, j, k: (i, j)),   # residual (f32), resident over k
            ],
            out_specs=pl.BlockSpec((tm, tn), lambda i, j, k: (i, j)),
            scratch_shapes=[pltpu.VMEM((tm, tn), jnp.float32)],
        ),
        compiler_params=pltpu.CompilerParams(
            dimension_semantics=("parallel", "parallel", "arbitrary"),
            vmem_limit_bytes=32 * 1024 * 1024,   # explicit budget, safe on v5e/v6e/v7x
        ),
        cost_estimate=cost,
    )(a, b, inp)


def _model_forward(x1, x2, inp):
    # v1 = inp @ x1 ; v2 = v1 + inp   (x2 unused, as in the PyTorch module)
    del x2
    M, K = inp.shape
    _, N = x1.shape
    # Tiny or (8,128)-unaligned problems: launch/pipeline overhead dominates -> fused XLA.
    if (M * N * K < (1 << 21)) or (M % 8) or (K % 128) or (N % 128) or (N != K):
        a = inp.astype(jnp.bfloat16)
        b = x1.astype(jnp.bfloat16)
        return (jnp.dot(a, b, preferred_element_type=jnp.float32) + inp).astype(inp.dtype)
    return mm_add(inp, x1)


model_forward = jax.jit(_model_forward)


if __name__ == "__main__":
    key = jax.random.PRNGKey(0)
    k1, k2, k3 = jax.random.split(key, 3)

    # Small but tile-aligned shapes: M=512, K=N=384 -> grid (2, 3, 3),
    # exercising the K accumulator, multi-tile N, and a >=2 parallel axis.
    M, K = 512, 384
    N = K
    inp = jax.random.normal(k1, (M, K), dtype=jnp.float32)
    x1 = jax.random.normal(k2, (K, N), dtype=jnp.float32)
    x2 = jax.random.normal(k3, (M, K), dtype=jnp.float32)  # unused input

    out = model_forward(x1, x2, inp)
    out = jax.block_until_ready(out)

    # Reference with the same numerics contract: bf16 operands, f32 accumulate, f32 add.
    ref = jnp.dot(inp.astype(jnp.bfloat16), x1.astype(jnp.bfloat16),
                  preferred_element_type=jnp.float32) + inp
    assert out.shape == ref.shape and out.dtype == ref.dtype
    assert jnp.allclose(out, ref, atol=1e-2, rtol=1e-2), "mismatch vs reference"

    print("KERNEL_OK")
</pallas_src>

<mosaic_0001>
module attributes {stable_mosaic.version = 11 : i64} {
  func.func @mm_add_kernel(%arg0: i32, %arg1: i32, %arg2: i32, %arg3: memref<256x128xbf16, #tpu.memory_space<vmem>>, %arg4: memref<128x128xbf16, #tpu.memory_space<vmem>>, %arg5: memref<256x128xf32, #tpu.memory_space<vmem>>, %arg6: memref<256x128xf32, #tpu.memory_space<vmem>>, %arg7: memref<256x128xf32, #tpu.memory_space<vmem>>) attributes {dimension_semantics = [#tpu.dimension_semantics<parallel>, #tpu.dimension_semantics<parallel>, #tpu.dimension_semantics<arbitrary>], iteration_bounds = array<i64: 2, 3, 3>, scalar_prefetch = 0 : i64, scratch_operands = 1 : i64, tpu.core_type = #tpu.core_type<tc>, window_params = [{transform_indices = @transform_0, window_bounds = array<i64: 256, 128>}, {transform_indices = @transform_1, window_bounds = array<i64: 128, 128>}, {transform_indices = @transform_2, window_bounds = array<i64: 256, 128>}, {transform_indices = @transform_3, window_bounds = array<i64: 256, 128>}]} {
    %c0_i32 = arith.constant 0 : i32
    %0 = arith.cmpi eq, %arg2, %c0_i32 : i32
    %1 = arith.extui %0 : i1 to i32
    %c0_i32_0 = arith.constant 0 : i32
    %2 = arith.cmpi ne, %1, %c0_i32_0 : i32
    scf.if %2 {
      %cst_9 = arith.constant 0.000000e+00 : f32
      %12 = vector.broadcast %cst_9 : f32 to vector<256x128xf32>
      %c0_10 = arith.constant 0 : index
      %c0_11 = arith.constant 0 : index
      %13 = vector.load %arg7[%c0_10, %c0_11] : memref<256x128xf32, #tpu.memory_space<vmem>>, vector<256x128xf32>
      tpu.vector_store %arg7[%c0_10, %c0_11], %12 {strides = array<i32>} : memref<256x128xf32, #tpu.memory_space<vmem>>, vector<256x128xf32>,
    } else {
    }
    %c0 = arith.constant 0 : index
    %c0_1 = arith.constant 0 : index
    %3 = vector.load %arg3[%c0, %c0_1] : memref<256x128xbf16, #tpu.memory_space<vmem>>, vector<256x128xbf16>
    %c0_2 = arith.constant 0 : index
    %c0_3 = arith.constant 0 : index
    %4 = vector.load %arg4[%c0_2, %c0_3] : memref<128x128xbf16, #tpu.memory_space<vmem>>, vector<128x128xbf16>
    %c0_4 = arith.constant 0 : index
    %c0_5 = arith.constant 0 : index
    %5 = vector.load %arg7[%c0_4, %c0_5] : memref<256x128xf32, #tpu.memory_space<vmem>>, vector<256x128xf32>
    %cst = arith.constant dense<0.000000e+00> : vector<256x128xf32>
    %6 = tpu.matmul %3, %4, %cst {dimension_numbers = #tpu.dot_dimension_numbers<[1], [0], [0], [1], [0, 0, 1, 1], [], []>} : vector<256x128xbf16>, vector<128x128xbf16>, vector<256x128xf32> -> vector<256x128xf32>
    %7 = arith.addf %5, %6 : vector<256x128xf32>
    %c0_6 = arith.constant 0 : index
    %c0_7 = arith.constant 0 : index
    %8 = vector.load %arg7[%c0_6, %c0_7] : memref<256x128xf32, #tpu.memory_space<vmem>>, vector<256x128xf32>
    tpu.vector_store %arg7[%c0_6, %c0_7], %7 {strides = array<i32>} : memref<256x128xf32, #tpu.memory_space<vmem>>, vector<256x128xf32>,
    %c2_i32 = arith.constant 2 : i32
    %9 = arith.cmpi eq, %arg2, %c2_i32 : i32
    %10 = arith.extui %9 : i1 to i32
    %c0_i32_8 = arith.constant 0 : i32
    %11 = arith.cmpi ne, %10, %c0_i32_8 : i32
    scf.if %11 {
      %c0_9 = arith.constant 0 : index
      %c0_10 = arith.constant 0 : index
      %12 = vector.load %arg7[%c0_9, %c0_10] : memref<256x128xf32, #tpu.memory_space<vmem>>, vector<256x128xf32>
      %c0_11 = arith.constant 0 : index
      %c0_12 = arith.constant 0 : index
      %13 = vector.load %arg5[%c0_11, %c0_12] : memref<256x128xf32, #tpu.memory_space<vmem>>, vector<256x128xf32>
      %14 = arith.addf %12, %13 : vector<256x128xf32>
      %c0_13 = arith.constant 0 : index
      %c0_14 = arith.constant 0 : index
      %15 = vector.load %arg6[%c0_13, %c0_14] : memref<256x128xf32, #tpu.memory_space<vmem>>, vector<256x128xf32>
      tpu.vector_store %arg6[%c0_13, %c0_14], %14 {strides = array<i32>} : memref<256x128xf32, #tpu.memory_space<vmem>>, vector<256x128xf32>,
    } else {
    }
    return
  }
  func.func @transform_0(%arg0: i32, %arg1: i32, %arg2: i32) -> (i32, i32) {
    %c0_i32 = arith.constant 0 : i32
    return %arg0, %arg2 : i32, i32
  }
  func.func @transform_1(%arg0: i32, %arg1: i32, %arg2: i32) -> (i32, i32) {
    %c0_i32 = arith.constant 0 : i32
    return %arg2, %arg1 : i32, i32
  }
  func.func @transform_2(%arg0: i32, %arg1: i32, %arg2: i32) -> (i32, i32) {
    %c0_i32 = arith.constant 0 : i32
    return %arg0, %arg1 : i32, i32
  }
  func.func @transform_3(%arg0: i32, %arg1: i32, %arg2: i32) -> (i32, i32) {
    %c0_i32 = arith.constant 0 : i32
    return %arg0, %arg1 : i32, i32
  }
}

</mosaic_0001>

<bundles_post_ra>
// kernel: _model_forward.1
= control target key start
LH: loop header
LB: loop body
LE: loop exit
PB: predicated region body
PF: predicated region fallthrough
CT: control target
= control target key end

     0   :  { %s2409_s0 = inlined_call_operand.vmem [shape: bf16[512,384], index: 0, kind: input, shape index: {}]   ;;  %s2410_s1 = inlined_call_operand.vmem [shape: bf16[384,384], index: 1, kind: input, shape index: {}]   ;;  %s2411_s2 = inlined_call_operand.vmem [shape: f32[512,384], index: 2, kind: input, shape index: {}]   ;;  %s2412_s3 = inlined_call_operand.hbm [shape: f32[512,384], index: 3, kind: output, shape index: {}]  }
   0x1   :  { %2417 = sst [smem:[#allocation14_spill]] %s2409_s0 }
   0x2   :  { %2418 = sst [smem:[#allocation15_spill]] %s2412_s3 }
   0x3   :  { %8 = vsyncpa [#allocation7], 0 }
   0x4   :  { %10 = vsyncpa [#allocation7 + $0x1], 0  ;;  %s1897_s12 = smov 0   ;;  %s1899_s13 = smov 0  }
   0x5   :  { %s1901_s14 = smov 0   ;;  %s1903_s15 = smov 0  }
   0x6   :  { %s1905_s16 = smov 0   ;;  %s1907_s17 = smov 0  }
   0x7   :  { %s1909_s18 = smov 0   ;;  %s1911_s19 = smov 0  }
   0x8   :  { %s1913_s20 = smov 0   ;;  %s1915_s21 = smov 0  }
   0x9   :  { %s1917_s22 = smov 0   ;;  %s1919_s23 = smov 0  }
   0xa   :  { %s1921_s24 = smov 0   ;;  %s1923_s25 = smov 0  }
   0xb LB: > { %2419 = sst [smem:[#allocation9_spill]] %s1850_s20  ;;  %s28_s28 = sadd.s32 1, %s1858_s22  ;;  %s1870_s25 = sphi %s1923_s25, %s16_s25   ;;  %s1866_s24 = sphi %s1921_s24, %s2451_s24   ;;  %s1862_s23 = sphi %s1919_s23, %s2450_s23   ;;  %s1858_s22 = sphi %s1917_s22, %s2449_s22   ;;  %s1854_s21 = sphi %s1915_s21, %s2448_s21   ;;  %s1850_s20 = sphi %s1913_s20, %s2447_s20   ;;  %s1846_s19 = sphi %s1911_s19, %s2446_s19   ;;  %s1842_s18 = sphi %s1909_s18, %s2445_s18   ;;  %s1838_s17 = sphi %s1907_s17, %s2444_s17   ;;  %s1834_s16 = sphi %s1905_s16, %s2443_s16   ;;  %s1830_s15 = sphi %s1903_s15, %s2442_s15   ;;  %s1826_s14 = sphi %s1901_s14, %s2441_s14   ;;  %s1822_s13 = sphi %s1899_s13, %s2440_s13   ;;  %s1818_s12 = sphi %s1897_s12, %s2439_s12  }
   0xc   : > { %2420 = sst [smem:[#allocation10_spill]] %s1854_s21  ;;  %s31_s29 = sadd.s32 1, %s1862_s23 }
   0xd   : > { %p29_p0 = scmp.ge.s32.totalorder %s28_s28, 3  ;;  %s35_s30 = sadd.s32 1, %s1866_s24 }
   0xe   : > { %s44_s4 = sadd.s32 1, %s1842_s18  ;;  %p51_p1 = scmp.ne.s32.totalorder %s1842_s18, %s1838_s17 }
   0xf   : > { %s2453_s28 = smov (%p29_p0, %s28_s28), 0  ;;  %s2455_s29 = smov (!%p29_p0, %s31_s29), %s1862_s23 }
  0x10   : > { %2421 = sst [smem:[#allocation11_spill]] %s2453_s28  ;;  %s40_s5 = ssub.s32 %s1858_s22, %s2453_s28 }
  0x11   : > { %p52_p2 = scmp.eq.s32.totalorder %s1870_s25, 0  ;;  %p33_p3 = scmp.ge.s32.totalorder %s2455_s29, 3 }
  0x12   : > { %s72_s6 = sadd.s32 1, %s1834_s16  ;;  %p79_p5 = scmp.ne.s32.totalorder %s1834_s16, %s1830_s15 }
  0x13   : > { %p1984_p4 = por %p52_p2, %p51_p1  ;;  %s2457_s29 = smov (%p33_p3, %s2455_s29), 0 }
  0x14   : > { %2423 = sst [smem:[#allocation12_spill]] %s2457_s29  ;;  %s2459_s30 = smov (!%p33_p3, %s35_s30), %s1866_s24 }
  0x15   : > { %s68_s8 = ssub.s32 %s1862_s23, %s2457_s29  ;;  %p1997_p6 = por %p79_p5, %p52_p2 }
  0x16   : > { %p37_p7 = scmp.ge.s32.totalorder %s2459_s30, 2  ;;  %s69_s10 = sor.u32 %s68_s8, %s40_s5 }
  0x17   : > { %p70_p8 = scmp.eq.s32.totalorder %s69_s10, 0  ;;  %s100_s11 = sadd.s32 1, %s1826_s14 }
  0x18   : > { %s2461_s30 = smov (%p37_p7, %s2459_s30), 0  ;;  %p107_p9 = scmp.ne.s32.totalorder %s1826_s14, %s1822_s13 }
  0x19   : > { %2425 = sst [smem:[#allocation13_spill]] %s2461_s30  ;;  %s39_s26 = ssub.s32 %s1866_s24, %s2461_s30 }
  0x1a   : > { %s2005_s27 = scalar_select %p70_p8, %s1834_s16, %s72_s6  }
  0x1b   : > { %s41_s29 = sor.u32 %s40_s5, %s39_s26  ;;  %s97_s28 = sor.u32 %s68_s8, %s39_s26 }
  0x1c   : > { %p42_p10 = scmp.eq.s32.totalorder %s41_s29, 0  ;;  %p98_p11 = scmp.eq.s32.totalorder %s97_s28, 0 }
  0x1d   : > { %p2013_p12 = por %p107_p9, %p52_p2  ;;  %s2427_s20 = sadd.s32 4294967295, %s1870_s25  }
  0x1e   : > { %p139_p13 = scmp.eq.s32.totalorder %s2427_s20, 17  ;;  %p144_p1 = scmp.ne.s32.totalorder %s1822_s13, %s1818_s12 }
  0x1f   : > { %s2020_s10 = scalar_select %p42_p10, %s1842_s18, %s44_s4  }
  0x20   : > { %s2023_s21 = scalar_select %p98_p11, %s1826_s14, %s100_s11  }
  0x21   : > { %p2025_p0 = por %p139_p13, %p107_p9  ;;  %s2429_s5 = sadd.s32 4294967294, %s1870_s25  }
  0x22   : > { %p145_p3 = scmp.eq.s32.totalorder %s2429_s5, 17  ;;  %p1439_p2 = scmp.ge.s32.totalorder %s1870_s25, 18 }
  0x24   : > { %p2033_p5 = por %p145_p3, %p144_p1  ;;  %161 = sbr.rel (%p1439_p2) target bundleno = 114 (0x72), region = 16 }
  0x2b   : > { %164 = sbr.rel (!%p1984_p4) target bundleno = 74 (0x4a), region = 20  ;;  %s166_s20 = sand.u32 (%p1984_p4), 1, %s1842_s18  }
  0x2c   : > { %s1577_s28 = smul.u32 (%p1984_p4), 96, %s1866_s24  ;;  %s1440_s29 = sshll.u32 (%p1984_p4), %s166_s20, 7 }
  0x2d   : > { %s2431_s0 = sld [smem:[#allocation14_spill]] (%p1984_p4)  ;;  %s2051_s7 = scalar_lea.vmem (%p1984_p4), [#allocation3], %s1440_s29 }
  0x2e   : > { %s171_s4 = sadd.s32 (%p1984_p4), %s1858_s22, %s1577_s28 }
  0x2f   : > { %s1443_s8 = sshll.u32 (%p1984_p4), %s171_s4, 2 }
  0x33   : > { %s2046_s30 = scalar_lea.vmem %s2431_s0, %s1443_s8 }
  0x34   : > { %v189_v0 = vld [vmem:[%s2046_s30] sm:$0xf]  ;;  %v191_v1 = vld [vmem:[%s2046_s30 + $0xc] sm:$0xf]  ;;  %v193_v2 = vld [vmem:[%s2046_s30 + $0x18] sm:$0xf] }
  0x35   : > { %190 = vst [vmem:[%s2051_s7] sm:$0xf] %v189_v0  ;;  %192 = vst [vmem:[%s2051_s7 + $0x4] sm:$0xf] %v191_v1  ;;  %v195_v3 = vld [vmem:[%s2046_s30 + $0x24] sm:$0xf] }
  0x36   : > { %194 = vst [vmem:[%s2051_s7 + $0x8] sm:$0xf] %v193_v2  ;;  %v197_v4 = vld [vmem:[%s2046_s30 + $0x30] sm:$0xf]  ;;  %v199_v5 = vld [vmem:[%s2046_s30 + $0x3c] sm:$0xf] }
  0x37   : > { %196 = vst [vmem:[%s2051_s7 + $0xc] sm:$0xf] %v195_v3  ;;  %198 = vst [vmem:[%s2051_s7 + $0x10] sm:$0xf] %v197_v4  ;;  %v201_v6 = vld [vmem:[%s2046_s30 + $0x48] sm:$0xf] }
  0x38   : > { %200 = vst [vmem:[%s2051_s7 + $0x14] sm:$0xf] %v199_v5  ;;  %v203_v7 = vld [vmem:[%s2046_s30 + $0x54] sm:$0xf]  ;;  %v205_v8 = vld [vmem:[%s2046_s30 + $0x60] sm:$0xf] }
  0x39   : > { %202 = vst [vmem:[%s2051_s7 + $0x18] sm:$0xf] %v201_v6  ;;  %204 = vst [vmem:[%s2051_s7 + $0x1c] sm:$0xf] %v203_v7  ;;  %v207_v9 = vld [vmem:[%s2046_s30 + $0x6c] sm:$0xf] }
  0x3a   : > { %206 = vst [vmem:[%s2051_s7 + $0x20] sm:$0xf] %v205_v8  ;;  %v209_v10 = vld [vmem:[%s2046_s30 + $0x78] sm:$0xf]  ;;  %v211_v11 = vld [vmem:[%s2046_s30 + $0x84] sm:$0xf] }
  0x3b   : > { %208 = vst [vmem:[%s2051_s7 + $0x24] sm:$0xf] %v207_v9  ;;  %210 = vst [vmem:[%s2051_s7 + $0x28] sm:$0xf] %v209_v10  ;;  %v213_v12 = vld [vmem:[%s2046_s30 + $0x90] sm:$0xf] }
  0x3c   : > { %212 = vst [vmem:[%s2051_s7 + $0x2c] sm:$0xf] %v211_v11  ;;  %v215_v13 = vld [vmem:[%s2046_s30 + $0x9c] sm:$0xf]  ;;  %v217_v14 = vld [vmem:[%s2046_s30 + $0xa8] sm:$0xf] }
  0x3d   : > { %214 = vst [vmem:[%s2051_s7 + $0x30] sm:$0xf] %v213_v12  ;;  %216 = vst [vmem:[%s2051_s7 + $0x34] sm:$0xf] %v215_v13  ;;  %v219_v15 = vld [vmem:[%s2046_s30 + $0xb4] sm:$0xf] }
  0x3e   : > { %218 = vst [vmem:[%s2051_s7 + $0x38] sm:$0xf] %v217_v14  ;;  %v221_v16 = vld [vmem:[%s2046_s30 + $0xc0] sm:$0xf]  ;;  %v223_v17 = vld [vmem:[%s2046_s30 + $0xcc] sm:$0xf] }
  0x3f   : > { %220 = vst [vmem:[%s2051_s7 + $0x3c] sm:$0xf] %v219_v15  ;;  %222 = vst [vmem:[%s2051_s7 + $0x40] sm:$0xf] %v221_v16  ;;  %v225_v18 = vld [vmem:[%s2046_s30 + $0xd8] sm:$0xf] }
  0x40   : > { %224 = vst [vmem:[%s2051_s7 + $0x44] sm:$0xf] %v223_v17  ;;  %v227_v19 = vld [vmem:[%s2046_s30 + $0xe4] sm:$0xf]  ;;  %v229_v20 = vld [vmem:[%s2046_s30 + $0xf0] sm:$0xf] }
  0x41   : > { %226 = vst [vmem:[%s2051_s7 + $0x48] sm:$0xf] %v225_v18  ;;  %228 = vst [vmem:[%s2051_s7 + $0x4c] sm:$0xf] %v227_v19  ;;  %v231_v21 = vld [vmem:[%s2046_s30 + $0xfc] sm:$0xf] }
  0x42   : > { %230 = vst [vmem:[%s2051_s7 + $0x50] sm:$0xf] %v229_v20  ;;  %v233_v22 = vld [vmem:[%s2046_s30 + $0x108] sm:$0xf]  ;;  %v235_v23 = vld [vmem:[%s2046_s30 + $0x114] sm:$0xf] }
  0x43   : > { %232 = vst [vmem:[%s2051_s7 + $0x54] sm:$0xf] %v231_v21  ;;  %234 = vst [vmem:[%s2051_s7 + $0x58] sm:$0xf] %v233_v22  ;;  %v237_v24 = vld [vmem:[%s2046_s30 + $0x120] sm:$0xf] }
  0x44   : > { %236 = vst [vmem:[%s2051_s7 + $0x5c] sm:$0xf] %v235_v23  ;;  %v239_v25 = vld [vmem:[%s2046_s30 + $0x12c] sm:$0xf]  ;;  %v241_v26 = vld [vmem:[%s2046_s30 + $0x138] sm:$0xf] }
  0x45   : > { %238 = vst [vmem:[%s2051_s7 + $0x60] sm:$0xf] %v237_v24  ;;  %240 = vst [vmem:[%s2051_s7 + $0x64] sm:$0xf] %v239_v25  ;;  %v243_v27 = vld [vmem:[%s2046_s30 + $0x144] sm:$0xf] }
  0x46   : > { %242 = vst [vmem:[%s2051_s7 + $0x68] sm:$0xf] %v241_v26  ;;  %v245_v28 = vld [vmem:[%s2046_s30 + $0x150] sm:$0xf]  ;;  %v247_v29 = vld [vmem:[%s2046_s30 + $0x15c] sm:$0xf] }
  0x47   : > { %244 = vst [vmem:[%s2051_s7 + $0x6c] sm:$0xf] %v243_v27  ;;  %246 = vst [vmem:[%s2051_s7 + $0x70] sm:$0xf] %v245_v28  ;;  %v249_v30 = vld [vmem:[%s2046_s30 + $0x168] sm:$0xf] }
  0x48   : > { %248 = vst [vmem:[%s2051_s7 + $0x74] sm:$0xf] %v247_v29  ;;  %v251_v31 = vld [vmem:[%s2046_s30 + $0x174] sm:$0xf]  ;;  %250 = vst [vmem:[%s2051_s7 + $0x78] sm:$0xf] %v249_v30 }
  0x49   : > { %252 = vst [vmem:[%s2051_s7 + $0x7c] sm:$0xf] %v251_v31 }
  0x4a PF: > { %339 = sbr.rel (!%p1997_p6) target bundleno = 91 (0x5b), region = 61  ;;  %s341_s20 = sand.u32 (%p1997_p6), 1, %s1834_s16  }
  0x4b   : > { %s1578_s28 = smul.u32 (%p1997_p6), 48, %s1858_s22  ;;  %s1444_s29 = sshll.u32 (%p1997_p6), %s341_s20, 6 }
  0x4c   : > { %s343_s30 = scalar_lea.vmem (%p1997_p6), [#allocation4], %s1444_s29 }
  0x4d   : > { %s346_s4 = sadd.s32 (%p1997_p6), %s1862_s23, %s1578_s28 }
  0x4e   : > { %s1447_s8 = sshll.u32 (%p1997_p6), %s346_s4, 2 }
  0x4f   : > { %s2122_s0 = scalar_lea.vmem (%p1997_p6), %s2410_s1, %s1447_s8 }
  0x50   : > { %v364_v32 = vld [vmem:[%s2122_s0] sm:$0xf] (%p1997_p6)  ;;  %v366_v33 = vld [vmem:[%s2122_s0 + $0xc] sm:$0xf] (%p1997_p6)  ;;  %v368_v34 = vld [vmem:[%s2122_s0 + $0x18] sm:$0xf] (%p1997_p6) }
  0x51   : > { %365 = vst [vmem:[%s343_s30] sm:$0xf] %v364_v32  ;;  %367 = vst [vmem:[%s343_s30 + $0x4] sm:$0xf] %v366_v33  ;;  %v370_v35 = vld [vmem:[%s2122_s0 + $0x24] sm:$0xf] }
  0x52   : > { %369 = vst [vmem:[%s343_s30 + $0x8] sm:$0xf] %v368_v34  ;;  %v372_v36 = vld [vmem:[%s2122_s0 + $0x30] sm:$0xf]  ;;  %v374_v37 = vld [vmem:[%s2122_s0 + $0x3c] sm:$0xf] }
  0x53   : > { %371 = vst [vmem:[%s343_s30 + $0xc] sm:$0xf] %v370_v35  ;;  %373 = vst [vmem:[%s343_s30 + $0x10] sm:$0xf] %v372_v36  ;;  %v376_v38 = vld [vmem:[%s2122_s0 + $0x48] sm:$0xf] }
  0x54   : > { %375 = vst [vmem:[%s343_s30 + $0x14] sm:$0xf] %v374_v37  ;;  %v378_v39 = vld [vmem:[%s2122_s0 + $0x54] sm:$0xf]  ;;  %v380_v40 = vld [vmem:[%s2122_s0 + $0x60] sm:$0xf] }
  0x55   : > { %377 = vst [vmem:[%s343_s30 + $0x18] sm:$0xf] %v376_v38  ;;  %379 = vst [vmem:[%s343_s30 + $0x1c] sm:$0xf] %v378_v39  ;;  %v382_v41 = vld [vmem:[%s2122_s0 + $0x6c] sm:$0xf] }
  0x56   : > { %381 = vst [vmem:[%s343_s30 + $0x20] sm:$0xf] %v380_v40  ;;  %v384_v42 = vld [vmem:[%s2122_s0 + $0x78] sm:$0xf]  ;;  %v386_v43 = vld [vmem:[%s2122_s0 + $0x84] sm:$0xf] }
  0x57   : > { %383 = vst [vmem:[%s343_s30 + $0x24] sm:$0xf] %v382_v41  ;;  %385 = vst [vmem:[%s343_s30 + $0x28] sm:$0xf] %v384_v42  ;;  %v388_v44 = vld [vmem:[%s2122_s0 + $0x90] sm:$0xf] }
  0x58   : > { %387 = vst [vmem:[%s343_s30 + $0x2c] sm:$0xf] %v386_v43  ;;  %v390_v45 = vld [vmem:[%s2122_s0 + $0x9c] sm:$0xf]  ;;  %v392_v46 = vld [vmem:[%s2122_s0 + $0xa8] sm:$0xf] }
  0x59   : > { %389 = vst [vmem:[%s343_s30 + $0x30] sm:$0xf] %v388_v44  ;;  %391 = vst [vmem:[%s343_s30 + $0x34] sm:$0xf] %v390_v45  ;;  %v394_v47 = vld [vmem:[%s2122_s0 + $0xb4] sm:$0xf] }
  0x5a   : > { %393 = vst [vmem:[%s343_s30 + $0x38] sm:$0xf] %v392_v46  ;;  %395 = vst [vmem:[%s343_s30 + $0x3c] sm:$0xf] %v394_v47 }
  0x5b PF: > { %450 = sbr.rel (!%p2013_p12) target bundleno = 114 (0x72), region = 102  ;;  %s452_s9 = sand.u32 (%p2013_p12), 1, %s1826_s14  }
  0x5c   : > { %s1579_s7 = smul.u32 (%p2013_p12), 96, %s1866_s24  ;;  %s1448_s20 = sshll.u32 (%p2013_p12), %s452_s9, 8 }
  0x5d   : > { %s2153_s0 = scalar_lea.vmem (%p2013_p12), [#allocation5], %s1448_s20 }
  0x5e   : > { %s457_s28 = sadd.s32 (%p2013_p12), %s1862_s23, %s1579_s7 }
  0x5f   : > { %s1451_s29 = sshll.u32 (%p2013_p12), %s457_s28, 3 }
  0x60   : > { %s2148_s11 = scalar_lea.vmem (%p2013_p12), %s2411_s2, %s1451_s29 }
  0x61   : > { %v549_v48 = vld [vmem:[%s2148_s11] sm:$0xff] (%p2013_p12)  ;;  %v551_v49 = vld [vmem:[%s2148_s11 + $0x18] sm:$0xff] (%p2013_p12)  ;;  %v553_v50 = vld [vmem:[%s2148_s11 + $0x30] sm:$0xff] (%p2013_p12) }
  0x62   : > { %550 = vst [vmem:[%s2153_s0] sm:$0xff] %v549_v48  ;;  %552 = vst [vmem:[%s2153_s0 + $0x8] sm:$0xff] %v551_v49  ;;  %v555_v51 = vld [vmem:[%s2148_s11 + $0x48] sm:$0xff]  ;;  %v557_v52 = vld [vmem:[%s2148_s11 + $0x60] sm:$0xff] }
  0x63   : > { %554 = vst [vmem:[%s2153_s0 + $0x10] sm:$0xff] %v553_v50  ;;  %v559_v53 = vld [vmem:[%s2148_s11 + $0x78] sm:$0xff]  ;;  %556 = vst [vmem:[%s2153_s0 + $0x18] sm:$0xff] %v555_v51  ;;  %v561_v54 = vld [vmem:[%s2148_s11 + $0x90] sm:$0xff] }
  0x64   : > { %558 = vst [vmem:[%s2153_s0 + $0x20] sm:$0xff] %v557_v52  ;;  %560 = vst [vmem:[%s2153_s0 + $0x28] sm:$0xff] %v559_v53  ;;  %v563_v55 = vld [vmem:[%s2148_s11 + $0xa8] sm:$0xff]  ;;  %v565_v56 = vld [vmem:[%s2148_s11 + $0xc0] sm:$0xff] }
  0x65   : > { %562 = vst [vmem:[%s2153_s0 + $0x30] sm:$0xff] %v561_v54  ;;  %564 = vst [vmem:[%s2153_s0 + $0x38] sm:$0xff] %v563_v55  ;;  %v567_v57 = vld [vmem:[%s2148_s11 + $0xd8] sm:$0xff]  ;;  %v569_v58 = vld [vmem:[%s2148_s11 + $0xf0] sm:$0xff] }
  0x66   : > { %566 = vst [vmem:[%s2153_s0 + $0x40] sm:$0xff] %v565_v56  ;;  %v571_v59 = vld [vmem:[%s2148_s11 + $0x108] sm:$0xff]  ;;  %568 = vst [vmem:[%s2153_s0 + $0x48] sm:$0xff] %v567_v57  ;;  %v573_v60 = vld [vmem:[%s2148_s11 + $0x120] sm:$0xff] }
  0x67   : > { %570 = vst [vmem:[%s2153_s0 + $0x50] sm:$0xff] %v569_v58  ;;  %572 = vst [vmem:[%s2153_s0 + $0x58] sm:$0xff] %v571_v59  ;;  %v575_v61 = vld [vmem:[%s2148_s11 + $0x138] sm:$0xff]  ;;  %v577_v62 = vld [vmem:[%s2148_s11 + $0x150] sm:$0xff] }
  0x68   : > { %574 = vst [vmem:[%s2153_s0 + $0x60] sm:$0xff] %v573_v60  ;;  %576 = vst [vmem:[%s2153_s0 + $0x68] sm:$0xff] %v575_v61  ;;  %v579_v63 = vld [vmem:[%s2148_s11 + $0x168] sm:$0xff]  ;;  %v581_v0 = vld [vmem:[%s2148_s11 + $0x180] sm:$0xff] }
  0x69   : > { %578 = vst [vmem:[%s2153_s0 + $0x70] sm:$0xff] %v577_v62  ;;  %v583_v1 = vld [vmem:[%s2148_s11 + $0x198] sm:$0xff]  ;;  %580 = vst [vmem:[%s2153_s0 + $0x78] sm:$0xff] %v579_v63  ;;  %v585_v2 = vld [vmem:[%s2148_s11 + $0x1b0] sm:$0xff] }
  0x6a   : > { %582 = vst [vmem:[%s2153_s0 + $0x80] sm:$0xff] %v581_v0  ;;  %584 = vst [vmem:[%s2153_s0 + $0x88] sm:$0xff] %v583_v1  ;;  %v587_v3 = vld [vmem:[%s2148_s11 + $0x1c8] sm:$0xff]  ;;  %v589_v4 = vld [vmem:[%s2148_s11 + $0x1e0] sm:$0xff] }
  0x6b   : > { %586 = vst [vmem:[%s2153_s0 + $0x90] sm:$0xff] %v585_v2  ;;  %588 = vst [vmem:[%s2153_s0 + $0x98] sm:$0xff] %v587_v3  ;;  %v591_v5 = vld [vmem:[%s2148_s11 + $0x1f8] sm:$0xff]  ;;  %v593_v6 = vld [vmem:[%s2148_s11 + $0x210] sm:$0xff] }
  0x6c   : > { %590 = vst [vmem:[%s2153_s0 + $0xa0] sm:$0xff] %v589_v4  ;;  %v595_v7 = vld [vmem:[%s2148_s11 + $0x228] sm:$0xff]  ;;  %592 = vst [vmem:[%s2153_s0 + $0xa8] sm:$0xff] %v591_v5  ;;  %v597_v8 = vld [vmem:[%s2148_s11 + $0x240] sm:$0xff] }
  0x6d   : > { %594 = vst [vmem:[%s2153_s0 + $0xb0] sm:$0xff] %v593_v6  ;;  %596 = vst [vmem:[%s2153_s0 + $0xb8] sm:$0xff] %v595_v7  ;;  %v599_v9 = vld [vmem:[%s2148_s11 + $0x258] sm:$0xff]  ;;  %v601_v10 = vld [vmem:[%s2148_s11 + $0x270] sm:$0xff] }
  0x6e   : > { %598 = vst [vmem:[%s2153_s0 + $0xc0] sm:$0xff] %v597_v8  ;;  %600 = vst [vmem:[%s2153_s0 + $0xc8] sm:$0xff] %v599_v9  ;;  %v603_v11 = vld [vmem:[%s2148_s11 + $0x288] sm:$0xff]  ;;  %v605_v12 = vld [vmem:[%s2148_s11 + $0x2a0] sm:$0xff] }
  0x6f   : > { %602 = vst [vmem:[%s2153_s0 + $0xd0] sm:$0xff] %v601_v10  ;;  %v607_v13 = vld [vmem:[%s2148_s11 + $0x2b8] sm:$0xff]  ;;  %604 = vst [vmem:[%s2153_s0 + $0xd8] sm:$0xff] %v603_v11  ;;  %v609_v14 = vld [vmem:[%s2148_s11 + $0x2d0] sm:$0xff] }
  0x70   : > { %606 = vst [vmem:[%s2153_s0 + $0xe0] sm:$0xff] %v605_v12  ;;  %608 = vst [vmem:[%s2153_s0 + $0xe8] sm:$0xff] %v607_v13  ;;  %v611_v15 = vld [vmem:[%s2148_s11 + $0x2e8] sm:$0xff] }
  0x71   : > { %610 = vst [vmem:[%s2153_s0 + $0xf0] sm:$0xff] %v609_v14  ;;  %612 = vst [vmem:[%s2153_s0 + $0xf8] sm:$0xff] %v611_v15 }
  0x72 PF: > { %p1452_p4 = scmp.ge.s32.totalorder %s1870_s25, 1  ;;  %p617_p6 = scmp.lt.s32.totalorder %s1870_s25, 19 }
  0x74   : > { %p618_p7 = pnand %p1452_p4, %p617_p6 }
  0x75   : > { %s624_s3 = sand.u32 (!%p618_p7), 1, %s1838_s17   ;;  %s631_s5 = sand.u32 (!%p618_p7), 1, %s1830_s15  }
  0x76   : > { %621 = sbr.rel (%p618_p7) target bundleno = 459 (0x1cb), region = 140  ;;  %s1453_s30 = sshll.u32 (!%p618_p7), %s624_s3, 7 }
  0x77   : > { %s1454_s9 = sshll.u32 (!%p618_p7), %s631_s5, 6  ;;  %s638_s7 = sand.u32 (!%p618_p7), 1, %s1822_s13  }
  0x78   : > { %s1455_s20 = sshll.u32 (!%p618_p7), %s638_s7, 8  ;;  %s2223_s28 = scalar_lea.vmem (!%p618_p7), [#allocation3], %s1453_s30 }
  0x79   : > { %s2225_s29 = scalar_lea.vmem (!%p618_p7), [#allocation4], %s1454_s9  ;;  %s2227_s4 = scalar_lea.vmem (!%p618_p7), [#allocation5], %s1455_s20 }
  0x7a   : > { %s2229_s8 = scalar_lea.vmem (!%p618_p7), [#allocation6], %s1455_s20  ;;  %p1457_p8 = scmp.ne.s32.totalorder (!%p618_p7), %s1846_s19, 0 }
  0x7d   : > { %677 = sbr.rel (%p1457_p8) target bundleno = 142 (0x8e), region = 156  ;;  %v1872_v16 = vmov (!%p1457_p8), 0.0  }
  0x7e   : > { %678 = vst [vmem:[#allocation2] sm:$0xff] (!%p1457_p8), %v1872_v16  ;;  %679 = vst [vmem:[#allocation2 + $0x8] sm:$0xff] (!%p1457_p8), %v1872_v16 }
  0x7f   : > { %680 = vst [vmem:[#allocation2 + $0x10] sm:$0xff] (!%p1457_p8), %v1872_v16  ;;  %681 = vst [vmem:[#allocation2 + $0x18] sm:$0xff] (!%p1457_p8), %v1872_v16 }
  0x80   : > { %682 = vst [vmem:[#allocation2 + $0x20] sm:$0xff] (!%p1457_p8), %v1872_v16  ;;  %683 = vst [vmem:[#allocation2 + $0x28] sm:$0xff] (!%p1457_p8), %v1872_v16 }
  0x81   : > { %684 = vst [vmem:[#allocation2 + $0x30] sm:$0xff] (!%p1457_p8), %v1872_v16  ;;  %685 = vst [vmem:[#allocation2 + $0x38] sm:$0xff] (!%p1457_p8), %v1872_v16 }
  0x82   : > { %686 = vst [vmem:[#allocation2 + $0x40] sm:$0xff] (!%p1457_p8), %v1872_v16  ;;  %687 = vst [vmem:[#allocation2 + $0x48] sm:$0xff] (!%p1457_p8), %v1872_v16 }
  0x83   : > { %688 = vst [vmem:[#allocation2 + $0x50] sm:$0xff] (!%p1457_p8), %v1872_v16  ;;  %689 = vst [vmem:[#allocation2 + $0x58] sm:$0xff] (!%p1457_p8), %v1872_v16 }
  0x84   : > { %690 = vst [vmem:[#allocation2 + $0x60] sm:$0xff] %v1872_v16  ;;  %691 = vst [vmem:[#allocation2 + $0x68] sm:$0xff] %v1872_v16 }
  0x85   : > { %692 = vst [vmem:[#allocation2 + $0x70] sm:$0xff] %v1872_v16  ;;  %693 = vst [vmem:[#allocation2 + $0x78] sm:$0xff] %v1872_v16 }
  0x86   : > { %694 = vst [vmem:[#allocation2 + $0x80] sm:$0xff] %v1872_v16  ;;  %695 = vst [vmem:[#allocation2 + $0x88] sm:$0xff] %v1872_v16 }
  0x87   : > { %696 = vst [vmem:[#allocation2 + $0x90] sm:$0xff] %v1872_v16  ;;  %697 = vst [vmem:[#allocation2 + $0x98] sm:$0xff] %v1872_v16 }
  0x88   : > { %698 = vst [vmem:[#allocation2 + $0xa0] sm:$0xff] %v1872_v16  ;;  %699 = vst [vmem:[#allocation2 + $0xa8] sm:$0xff] %v1872_v16 }
  0x89   : > { %700 = vst [vmem:[#allocation2 + $0xb0] sm:$0xff] %v1872_v16  ;;  %701 = vst [vmem:[#allocation2 + $0xb8] sm:$0xff] %v1872_v16 }
  0x8a   : > { %702 = vst [vmem:[#allocation2 + $0xc0] sm:$0xff] %v1872_v16  ;;  %703 = vst [vmem:[#allocation2 + $0xc8] sm:$0xff] %v1872_v16 }
  0x8b   : > { %704 = vst [vmem:[#allocation2 + $0xd0] sm:$0xff] %v1872_v16  ;;  %705 = vst [vmem:[#allocation2 + $0xd8] sm:$0xff] %v1872_v16 }
  0x8c   : > { %706 = vst [vmem:[#allocation2 + $0xe0] sm:$0xff] %v1872_v16  ;;  %707 = vst [vmem:[#allocation2 + $0xe8] sm:$0xff] %v1872_v16 }
  0x8d   : > { %708 = vst [vmem:[#allocation2 + $0xf0] sm:$0xff] %v1872_v16  ;;  %709 = vst [vmem:[#allocation2 + $0xf8] sm:$0xff] %v1872_v16 }
  0x8e PF: > { %v1704_v17 = vld [vmem:[%s2225_s29] sm:$0xff]   ;;  %v1705_v18 = vld [vmem:[%s2225_s29 + $0x8] sm:$0xff]   ;;  %v1706_v19 = vld [vmem:[%s2225_s29 + $0x10] sm:$0xff]   ;;  %p1482_p9 = scmp.ne.s32.totalorder %s1846_s19, 2 }
  0x8f   : > { %1513 = vmatprep.subr.bf16.mxu0 %v1704_v17  ;;  %1561 = vmatprep.subr.bf16.mxu1 %v1704_v17  ;;  %v1707_v20 = vld [vmem:[%s2225_s29 + $0x18] sm:$0xff]   ;;  %v1712_v21 = vld [vmem:[%s2223_s28] sm:$0xff]   ;;  %v1709_v24 = vld [vmem:[%s2225_s29 + $0x28] sm:$0xff]  }
  0x90   : > { %1514 = vmatpush3.bf16.msra.mxu0 %v1704_v17  ;;  %1569 = vmatpush3.bf16.msra.mxu1 %v1704_v17  ;;  %v1713_v22 = vld [vmem:[%s2223_s28 + $0x40] sm:$0xff]   ;;  %v1710_v25 = vld [vmem:[%s2225_s29 + $0x30] sm:$0xff]   ;;  %v1711_v26 = vld [vmem:[%s2225_s29 + $0x38] sm:$0xff]  }
  0x91   : > { %1515 = vmatprep.subr.bf16.mxu0 %v1705_v18  ;;  %1562 = vmatprep.subr.bf16.mxu1 %v1705_v18  ;;  %v1708_v23 = vld [vmem:[%s2225_s29 + $0x20] sm:$0xff]   ;;  %v1714_v27 = vld [vmem:[%s2223_s28 + $0x8] sm:$0xff]   ;;  %v1716_v29 = vld [vmem:[%s2223_s28 + $0x10] sm:$0xff]  }
  0x92   : > { %1529 = vmatprep.mubr.bf16.mxu0 %v1712_v21  ;;  %1545 = vmatprep.mubr.bf16.mxu1 %v1713_v22  ;;  %v1715_v28 = vld [vmem:[%s2223_s28 + $0x48] sm:$0xff]   ;;  %v1717_v30 = vld [vmem:[%s2223_s28 + $0x50] sm:$0xff]   ;;  %v1718_v31 = vld [vmem:[%s2223_s28 + $0x18] sm:$0xff]  }
  0x93   : > { %v1719_v32 = vld [vmem:[%s2223_s28 + $0x58] sm:$0xff]   ;;  %v1720_v33 = vld [vmem:[%s2223_s28 + $0x20] sm:$0xff]   ;;  %v1722_v35 = vld [vmem:[%s2223_s28 + $0x28] sm:$0xff]  }
  0x94   : > { %1516 = vmatpush3.bf16.msra.mxu0 %v1705_v18  ;;  %1570 = vmatpush3.bf16.msra.mxu1 %v1705_v18  ;;  %v1721_v34 = vld [vmem:[%s2223_s28 + $0x60] sm:$0xff]   ;;  %v1723_v36 = vld [vmem:[%s2223_s28 + $0x68] sm:$0xff]   ;;  %v1724_v37 = vld [vmem:[%s2223_s28 + $0x30] sm:$0xff]  }
  0x95   : > { %1517 = vmatprep.subr.bf16.mxu0 %v1706_v19  ;;  %1563 = vmatprep.subr.bf16.mxu1 %v1706_v19  ;;  %v1725_v38 = vld [vmem:[%s2223_s28 + $0x70] sm:$0xff]   ;;  %v1726_v39 = vld [vmem:[%s2223_s28 + $0x38] sm:$0xff]   ;;  %v758_v43 = vld [vmem:[#allocation2] sm:$0xff] }
  0x96   : > { %v1727_v40 = vld [vmem:[%s2223_s28 + $0x78] sm:$0xff]   ;;  %v760_v41 = vld [vmem:[#allocation2 + $0x10] sm:$0xff]  ;;  %v774_v44 = vld [vmem:[#allocation2 + $0x80] sm:$0xff] }
  0x97   : > { %v776_v42 = vld [vmem:[#allocation2 + $0x90] sm:$0xff]  ;;  %v761_v47 = vld [vmem:[#allocation2 + $0x18] sm:$0xff]  ;;  %v759_v53 = vld [vmem:[#allocation2 + $0x8] sm:$0xff] }
  0x98   : > { %1518 = vmatpush3.bf16.msra.mxu0 %v1706_v19  ;;  %1571 = vmatpush3.bf16.msra.mxu1 %v1706_v19  ;;  %v777_v48 = vld [vmem:[#allocation2 + $0x98] sm:$0xff]  ;;  %v775_v54 = vld [vmem:[#allocation2 + $0x88] sm:$0xff]  ;;  %v764_v1 = vld [vmem:[#allocation2 + $0x30] sm:$0xff] }
  0x99   : > { %1519 = vmatprep.subr.bf16.mxu0 %v1707_v20  ;;  %1564 = vmatprep.subr.bf16.mxu1 %v1707_v20  ;;  %v780_v2 = vld [vmem:[#allocation2 + $0xb0] sm:$0xff]  ;;  %v762_v3 = vld [vmem:[#allocation2 + $0x20] sm:$0xff]  ;;  %v765_v7 = vld [vmem:[#allocation2 + $0x38] sm:$0xff] }
  0x9a   : > { %v778_v4 = vld [vmem:[#allocation2 + $0xa0] sm:$0xff]  ;;  %v781_v8 = vld [vmem:[#allocation2 + $0xb8] sm:$0xff]  ;;  %v763_v13 = vld [vmem:[#allocation2 + $0x28] sm:$0xff] }
  0x9b   : > { %v779_v14 = vld [vmem:[#allocation2 + $0xa8] sm:$0xff] }
  0x9c   : > { %1520 = vmatpush3.bf16.msra.mxu0 %v1707_v20  ;;  %1572 = vmatpush3.bf16.msra.mxu1 %v1707_v20 }
  0x9d   : > { %1521 = vmatprep.subr.bf16.mxu0 %v1708_v23  ;;  %1565 = vmatprep.subr.bf16.mxu1 %v1708_v23 }
  0xa0   : > { %1522 = vmatpush3.bf16.msra.mxu0 %v1708_v23  ;;  %1573 = vmatpush3.bf16.msra.mxu1 %v1708_v23 }
  0xa1   : > { %1523 = vmatprep.subr.bf16.mxu0 %v1709_v24  ;;  %1566 = vmatprep.subr.bf16.mxu1 %v1709_v24 }
  0xa4   : > { %1524 = vmatpush3.bf16.msra.mxu0 %v1709_v24  ;;  %1574 = vmatpush3.bf16.msra.mxu1 %v1709_v24 }
  0xa5   : > { %1525 = vmatprep.subr.bf16.mxu0 %v1710_v25  ;;  %1567 = vmatprep.subr.bf16.mxu1 %v1710_v25 }
  0xa8   : > { %1526 = vmatpush3.bf16.msra.mxu0 %v1710_v25  ;;  %1575 = vmatpush3.bf16.msra.mxu1 %v1710_v25  ;;  %v768_v25 = vld [vmem:[#allocation2 + $0x50] sm:$0xff] }
  0xa9   : > { %1527 = vmatprep.subr.bf16.mxu0 %v1711_v26  ;;  %1568 = vmatprep.subr.bf16.mxu1 %v1711_v26 }
  0xac   : > { %1528 = vmatpush3.bf16.msra.mxu0 %v1711_v26  ;;  %1576 = vmatpush3.bf16.msra.mxu1 %v1711_v26  ;;  %v784_v26 = vld [vmem:[#allocation2 + $0xd0] sm:$0xff] }
  0xaf   : > { %1530 = vmatmul.mubr.bf16.vlgmr.msra.gmra.mrb[0].mxu0 %v1714_v27  ;;  %1546 = vmatmul.mubr.bf16.vlgmr.msra.gmra.mrb[0].mxu1 %v1715_v28  ;;  %v766_v27 = vld [vmem:[#allocation2 + $0x40] sm:$0xff] }
  0xb0   : > { %1533 = vmatprep.mubr.bf16.mxu0 %v1716_v29  ;;  %1549 = vmatprep.mubr.bf16.mxu1 %v1717_v30  ;;  %v782_v28 = vld [vmem:[#allocation2 + $0xc0] sm:$0xff] }
  0xb7   : > { %1534 = vmatmul.mubr.bf16.gmra.mrb[4].mxu0 %v1718_v31  ;;  %1550 = vmatmul.mubr.bf16.gmra.mrb[4].mxu1 %v1719_v32  ;;  %v769_v31 = vld [vmem:[#allocation2 + $0x58] sm:$0xff] }
  0xb8   : > { %1537 = vmatprep.mubr.bf16.mxu0 %v1720_v33  ;;  %1553 = vmatprep.mubr.bf16.mxu1 %v1721_v34  ;;  %v785_v32 = vld [vmem:[#allocation2 + $0xd8] sm:$0xff] }
  0xbf   : > { %1538 = vmatmul.mubr.bf16.gmra.mrb[8].mxu0 %v1722_v35  ;;  %1554 = vmatmul.mubr.bf16.gmra.mrb[8].mxu1 %v1723_v36 }
  0xc0   : > { %1541 = vmatprep.mubr.bf16.mxu0 %v1724_v37  ;;  %1557 = vmatprep.mubr.bf16.mxu1 %v1725_v38  ;;  %v767_v37 = vld [vmem:[#allocation2 + $0x48] sm:$0xff] }
  0xc1   : > { %v783_v38 = vld [vmem:[#allocation2 + $0xc8] sm:$0xff] }
  0xc7   : > { %1542 = vmatmul.mubr.bf16.gmra.mrb[12].mxu0 %v1726_v39  ;;  %1558 = vmatmul.mubr.bf16.gmra.mrb[12].mxu1 %v1727_v40 }
 0x182   : > { %v1531_v45 = vpop.f32.mrb[0].mxu0  ;;  %v1547_v46 = vpop.f32.mrb[0].mxu1 }
 0x183   : > { %v1097_v49 = vadd.f32 %v1531_v45, %v760_v41  ;;  %v1113_v50 = vadd.f32 %v1547_v46, %v776_v42  ;;  %v968_v51 = vpop.f32.mrb[1].mxu0  ;;  %v1032_v52 = vpop.f32.mrb[1].mxu1 }
 0x184   : > { %v1095_v55 = vadd.f32 %v968_v51, %v758_v43  ;;  %v1111_v56 = vadd.f32 %v1032_v52, %v774_v44  ;;  %v1532_v57 = vpop.f32.mrb[2].mxu0  ;;  %v1548_v58 = vpop.f32.mrb[2].mxu1  ;;  %v770_v51 = vld [vmem:[#allocation2 + $0x60] sm:$0xff] }
 0x185   : > { %1129 = vst [vmem:[#allocation2 + $0x10] sm:$0xff] %v1097_v49  ;;  %1145 = vst [vmem:[#allocation2 + $0x90] sm:$0xff] %v1113_v50  ;;  %v1098_v59 = vadd.f32 %v1532_v57, %v761_v47  ;;  %v1114_v60 = vadd.f32 %v1548_v58, %v777_v48  ;;  %v971_v61 = vpop.f32.mrb[3].mxu0  ;;  %v1035_v62 = vpop.f32.mrb[3].mxu1  ;;  %v772_v49 = vld [vmem:[#allocation2 + $0x70] sm:$0xff]  ;;  %v786_v52 = vld [vmem:[#allocation2 + $0xe0] sm:$0xff] }
 0x186   : > { %1127 = vst [vmem:[#allocation2] sm:$0xff] %v1095_v55  ;;  %1143 = vst [vmem:[#allocation2 + $0x80] sm:$0xff] %v1111_v56  ;;  %v1096_v63 = vadd.f32 %v971_v61, %v759_v53  ;;  %v1112_v0 = vadd.f32 %v1035_v62, %v775_v54  ;;  %v788_v50 = vld [vmem:[#allocation2 + $0xf0] sm:$0xff]  ;;  %v773_v55 = vld [vmem:[#allocation2 + $0x78] sm:$0xff] }
 0x187   : > { %1130 = vst [vmem:[#allocation2 + $0x18] sm:$0xff] %v1098_v59  ;;  %1146 = vst [vmem:[#allocation2 + $0x98] sm:$0xff] %v1114_v60  ;;  %v789_v56 = vld [vmem:[#allocation2 + $0xf8] sm:$0xff]  ;;  %v771_v61 = vld [vmem:[#allocation2 + $0x68] sm:$0xff] }
 0x188   : > { %1128 = vst [vmem:[#allocation2 + $0x8] sm:$0xff] %v1096_v63  ;;  %1144 = vst [vmem:[#allocation2 + $0x88] sm:$0xff] %v1112_v0  ;;  %v787_v62 = vld [vmem:[#allocation2 + $0xe8] sm:$0xff] }
 0x18a   : > { %v1535_v5 = vpop.f32.mrb[4].mxu0  ;;  %v1551_v6 = vpop.f32.mrb[4].mxu1 }
 0x18b   : > { %v1101_v9 = vadd.f32 %v1535_v5, %v764_v1  ;;  %v1117_v10 = vadd.f32 %v1551_v6, %v780_v2  ;;  %v984_v11 = vpop.f32.mrb[5].mxu0  ;;  %v1048_v12 = vpop.f32.mrb[5].mxu1 }
 0x18c   : > { %v1099_v15 = vadd.f32 %v984_v11, %v762_v3  ;;  %v1115_v16 = vadd.f32 %v1048_v12, %v778_v4  ;;  %v1536_v17 = vpop.f32.mrb[6].mxu0  ;;  %v1552_v18 = vpop.f32.mrb[6].mxu1 }
 0x18d   : > { %1133 = vst [vmem:[#allocation2 + $0x30] sm:$0xff] %v1101_v9  ;;  %1149 = vst [vmem:[#allocation2 + $0xb0] sm:$0xff] %v1117_v10  ;;  %v1102_v19 = vadd.f32 %v1536_v17, %v765_v7  ;;  %v1118_v20 = vadd.f32 %v1552_v18, %v781_v8  ;;  %v987_v21 = vpop.f32.mrb[7].mxu0  ;;  %v1051_v22 = vpop.f32.mrb[7].mxu1  ;;  %v1163_v9 = vld [vmem:[#allocation2] sm:$0xff] (!%p1482_p9) }
 0x18e   : > { %1131 = vst [vmem:[#allocation2 + $0x20] sm:$0xff] %v1099_v15  ;;  %1147 = vst [vmem:[#allocation2 + $0xa0] sm:$0xff] %v1115_v16  ;;  %v1100_v23 = vadd.f32 %v987_v21, %v763_v13  ;;  %v1116_v24 = vadd.f32 %v1051_v22, %v779_v14  ;;  %v1195_v10 = vld [vmem:[%s2227_s4] sm:$0xff] (!%p1482_p9)  ;;  %v1196_v13 = vld [vmem:[%s2227_s4 + $0x8] sm:$0xff] (!%p1482_p9) }
 0x18f   : > { %1134 = vst [vmem:[#allocation2 + $0x38] sm:$0xff] %v1102_v19  ;;  %1150 = vst [vmem:[#allocation2 + $0xb8] sm:$0xff] %v1118_v20  ;;  %v1164_v11 = vld [vmem:[#allocation2 + $0x8] sm:$0xff] (!%p1482_p9)  ;;  %v1227_v12 = vadd.f32 (!%p1482_p9), %v1195_v10, %v1163_v9  ;;  %v1165_v14 = vld [vmem:[#allocation2 + $0x10] sm:$0xff] (!%p1482_p9) }
 0x190   : > { %1132 = vst [vmem:[#allocation2 + $0x28] sm:$0xff] %v1100_v23  ;;  %1148 = vst [vmem:[#allocation2 + $0xa8] sm:$0xff] %v1116_v24  ;;  %v1197_v15 = vld [vmem:[%s2227_s4 + $0x10] sm:$0xff] (!%p1482_p9)  ;;  %v1228_v16 = vadd.f32 (!%p1482_p9), %v1196_v13, %v1164_v11  ;;  %v1166_v18 = vld [vmem:[#allocation2 + $0x18] sm:$0xff] (!%p1482_p9) }
 0x191   : > { %v1229_v17 = vadd.f32 (!%p1482_p9), %v1197_v15, %v1165_v14  ;;  %v1198_v19 = vld [vmem:[%s2227_s4 + $0x18] sm:$0xff] (!%p1482_p9)  ;;  %1259 = vst [vmem:[%s2229_s8] sm:$0xff] (!%p1482_p9), %v1227_v12  ;;  %v1199_v22 = vld [vmem:[%s2227_s4 + $0x20] sm:$0xff] (!%p1482_p9)  ;;  %v1200_v24 = vld [vmem:[%s2227_s4 + $0x28] sm:$0xff] (!%p1482_p9) }
 0x192   : > { %v1539_v29 = vpop.f32.mrb[8].mxu0  ;;  %v1555_v30 = vpop.f32.mrb[8].mxu1  ;;  %v1230_v21 = vadd.f32 (!%p1482_p9), %v1198_v19, %v1166_v18  ;;  %1260 = vst [vmem:[%s2229_s8 + $0x8] sm:$0xff] (!%p1482_p9), %v1228_v16  ;;  %v1216_v9 = vld [vmem:[%s2227_s4 + $0xa8] sm:$0xff] (!%p1482_p9)  ;;  %v1217_v12 = vld [vmem:[%s2227_s4 + $0xb0] sm:$0xff] (!%p1482_p9)  ;;  %v1218_v14 = vld [vmem:[%s2227_s4 + $0xb8] sm:$0xff] (!%p1482_p9) }
 0x193   : > { %v1105_v33 = vadd.f32 %v1539_v29, %v768_v25  ;;  %v1121_v34 = vadd.f32 %v1555_v30, %v784_v26  ;;  %v1000_v35 = vpop.f32.mrb[9].mxu0  ;;  %v1064_v36 = vpop.f32.mrb[9].mxu1  ;;  %1261 = vst [vmem:[%s2229_s8 + $0x10] sm:$0xff] (!%p1482_p9), %v1229_v17  ;;  %v1219_v18 = vld [vmem:[%s2227_s4 + $0xc0] sm:$0xff] (!%p1482_p9) }
 0x194   : > { %v1103_v39 = vadd.f32 %v1000_v35, %v766_v27  ;;  %v1119_v40 = vadd.f32 %v1064_v36, %v782_v28  ;;  %v1540_v41 = vpop.f32.mrb[10].mxu0  ;;  %v1556_v42 = vpop.f32.mrb[10].mxu1  ;;  %v1169_v27 = vld [vmem:[#allocation2 + $0x30] sm:$0xff] (!%p1482_p9)  ;;  %1262 = vst [vmem:[%s2229_s8 + $0x18] sm:$0xff] (!%p1482_p9), %v1230_v21  ;;  %v1220_v21 = vld [vmem:[%s2227_s4 + $0xc8] sm:$0xff] (!%p1482_p9) }
 0x195   : > { %1137 = vst [vmem:[#allocation2 + $0x50] sm:$0xff] %v1105_v33  ;;  %1153 = vst [vmem:[#allocation2 + $0xd0] sm:$0xff] %v1121_v34  ;;  %v1106_v43 = vadd.f32 %v1540_v41, %v769_v31  ;;  %v1122_v44 = vadd.f32 %v1556_v42, %v785_v32  ;;  %v1003_v45 = vpop.f32.mrb[11].mxu0  ;;  %v1067_v46 = vpop.f32.mrb[11].mxu1  ;;  %v1167_v20 = vld [vmem:[#allocation2 + $0x20] sm:$0xff] (!%p1482_p9)  ;;  %v1201_v28 = vld [vmem:[%s2227_s4 + $0x30] sm:$0xff] (!%p1482_p9) }
 0x196   : > { %1135 = vst [vmem:[#allocation2 + $0x40] sm:$0xff] %v1103_v39  ;;  %1151 = vst [vmem:[#allocation2 + $0xc0] sm:$0xff] %v1119_v40  ;;  %v1104_v47 = vadd.f32 %v1003_v45, %v767_v37  ;;  %v1120_v48 = vadd.f32 %v1067_v46, %v783_v38  ;;  %v1231_v25 = vadd.f32 (!%p1482_p9), %v1199_v22, %v1167_v20  ;;  %v1170_v29 = vld [vmem:[#allocation2 + $0x38] sm:$0xff] (!%p1482_p9)  ;;  %v1203_v33 = vld [vmem:[%s2227_s4 + $0x40] sm:$0xff] (!%p1482_p9) }
 0x197   : > { %1138 = vst [vmem:[#allocation2 + $0x58] sm:$0xff] %v1106_v43  ;;  %1154 = vst [vmem:[#allocation2 + $0xd8] sm:$0xff] %v1122_v44  ;;  %v1168_v23 = vld [vmem:[#allocation2 + $0x28] sm:$0xff] (!%p1482_p9)  ;;  %v1233_v30 = vadd.f32 (!%p1482_p9), %v1201_v28, %v1169_v27  ;;  %v1202_v31 = vld [vmem:[%s2227_s4 + $0x38] sm:$0xff] (!%p1482_p9) }
 0x198   : > { %1136 = vst [vmem:[#allocation2 + $0x48] sm:$0xff] %v1104_v47  ;;  %1152 = vst [vmem:[#allocation2 + $0xc8] sm:$0xff] %v1120_v48  ;;  %v1232_v26 = vadd.f32 (!%p1482_p9), %v1200_v24, %v1168_v23  ;;  %v1234_v34 = vadd.f32 (!%p1482_p9), %v1202_v31, %v1170_v29  ;;  %v1204_v37 = vld [vmem:[%s2227_s4 + $0x48] sm:$0xff] (!%p1482_p9)  ;;  %v1205_v40 = vld [vmem:[%s2227_s4 + $0x50] sm:$0xff] (!%p1482_p9) }
 0x199   : > { %1263 = vst [vmem:[%s2229_s8 + $0x20] sm:$0xff] (!%p1482_p9), %v1231_v25  ;;  %1265 = vst [vmem:[%s2229_s8 + $0x30] sm:$0xff] (!%p1482_p9), %v1233_v30  ;;  %v1206_v42 = vld [vmem:[%s2227_s4 + $0x58] sm:$0xff] (!%p1482_p9)  ;;  %v1207_v46 = vld [vmem:[%s2227_s4 + $0x60] sm:$0xff] (!%p1482_p9) }
 0x19a   : > { %v1543_v53 = vpop.f32.mrb[12].mxu0  ;;  %v1559_v54 = vpop.f32.mrb[12].mxu1  ;;  %1162 = sbr.rel (%p1482_p9) target bundleno = 431 (0x1af), region = 160  ;;  %1264 = vst [vmem:[%s2229_s8 + $0x28] sm:$0xff] (!%p1482_p9), %v1232_v26  ;;  %1266 = vst [vmem:[%s2229_s8 + $0x38] sm:$0xff] (!%p1482_p9), %v1234_v34  ;;  %v1185_v10 = vld [vmem:[#allocation2 + $0xb0] sm:$0xff] (!%p1482_p9) }
 0x19b   : > { %v1109_v57 = vadd.f32 %v1543_v53, %v772_v49  ;;  %v1125_v58 = vadd.f32 %v1559_v54, %v788_v50  ;;  %v1016_v59 = vpop.f32.mrb[13].mxu0  ;;  %v1080_v60 = vpop.f32.mrb[13].mxu1  ;;  %v1208_v49 = vld [vmem:[%s2227_s4 + $0x68] sm:$0xff] (!%p1482_p9)  ;;  %v1186_v13 = vld [vmem:[#allocation2 + $0xb8] sm:$0xff] (!%p1482_p9)  ;;  %v1249_v15 = vadd.f32 (!%p1482_p9), %v1217_v12, %v1185_v10  ;;  %v1221_v23 = vld [vmem:[%s2227_s4 + $0xd0] sm:$0xff] (!%p1482_p9) }
 0x19c   : > { %v1107_v63 = vadd.f32 %v1016_v59, %v770_v51  ;;  %v1123_v0 = vadd.f32 %v1080_v60, %v786_v52  ;;  %v1544_v1 = vpop.f32.mrb[14].mxu0  ;;  %v1560_v2 = vpop.f32.mrb[14].mxu1  ;;  %v1173_v38 = vld [vmem:[#allocation2 + $0x50] sm:$0xff] (!%p1482_p9)  ;;  %v1180_v59 = vld [vmem:[#allocation2 + $0x88] sm:$0xff] (!%p1482_p9)  ;;  %v1250_v16 = vadd.f32 (!%p1482_p9), %v1218_v14, %v1186_v13  ;;  %v1222_v27 = vld [vmem:[%s2227_s4 + $0xd8] sm:$0xff] (!%p1482_p9) }
 0x19d   : > { %1141 = vst [vmem:[#allocation2 + $0x70] sm:$0xff] %v1109_v57  ;;  %1157 = vst [vmem:[#allocation2 + $0xf0] sm:$0xff] %v1125_v58  ;;  %v1110_v3 = vadd.f32 %v1544_v1, %v773_v55  ;;  %v1126_v4 = vadd.f32 %v1560_v2, %v789_v56  ;;  %v1019_v5 = vpop.f32.mrb[15].mxu0  ;;  %v1083_v6 = vpop.f32.mrb[15].mxu1  ;;  %v1171_v32 = vld [vmem:[#allocation2 + $0x40] sm:$0xff] (!%p1482_p9)  ;;  %v1237_v43 = vadd.f32 (!%p1482_p9), %v1205_v40, %v1173_v38  ;;  %v1209_v51 = vld [vmem:[%s2227_s4 + $0x70] sm:$0xff] (!%p1482_p9) }
 0x19e   : > { %1139 = vst [vmem:[#allocation2 + $0x60] sm:$0xff] %v1107_v63  ;;  %1155 = vst [vmem:[#allocation2 + $0xe0] sm:$0xff] %v1123_v0  ;;  %v1108_v7 = vadd.f32 %v1019_v5, %v771_v61  ;;  %v1124_v8 = vadd.f32 %v1083_v6, %v787_v62  ;;  %v1235_v35 = vadd.f32 (!%p1482_p9), %v1203_v33, %v1171_v32  ;;  %v1174_v41 = vld [vmem:[#allocation2 + $0x58] sm:$0xff] (!%p1482_p9)  ;;  %v1179_v56 = vld [vmem:[#allocation2 + $0x80] sm:$0xff] (!%p1482_p9) }
 0x19f   : > { %1142 = vst [vmem:[#allocation2 + $0x78] sm:$0xff] %v1110_v3  ;;  %1158 = vst [vmem:[#allocation2 + $0xf8] sm:$0xff] %v1126_v4  ;;  %v1172_v36 = vld [vmem:[#allocation2 + $0x48] sm:$0xff] (!%p1482_p9)  ;;  %v1238_v44 = vadd.f32 (!%p1482_p9), %v1206_v42, %v1174_v41  ;;  %v1210_v55 = vld [vmem:[%s2227_s4 + $0x78] sm:$0xff] (!%p1482_p9) }
 0x1a0   : > { %1140 = vst [vmem:[#allocation2 + $0x68] sm:$0xff] %v1108_v7  ;;  %1156 = vst [vmem:[#allocation2 + $0xe8] sm:$0xff] %v1124_v8  ;;  %v1236_v39 = vadd.f32 (!%p1482_p9), %v1204_v37, %v1172_v36  ;;  %v1211_v58 = vld [vmem:[%s2227_s4 + $0x80] sm:$0xff] (!%p1482_p9)  ;;  %v1212_v60 = vld [vmem:[%s2227_s4 + $0x88] sm:$0xff] (!%p1482_p9) }
 0x1a1   : > { %1267 = vst [vmem:[%s2229_s8 + $0x40] sm:$0xff] %v1235_v35  ;;  %1269 = vst [vmem:[%s2229_s8 + $0x50] sm:$0xff] %v1237_v43  ;;  %v1243_v61 = vadd.f32 %v1211_v58, %v1179_v56  ;;  %v1244_v62 = vadd.f32 %v1212_v60, %v1180_v59  ;;  %v1181_v63 = vld [vmem:[#allocation2 + $0x90] sm:$0xff]  ;;  %v1182_v1 = vld [vmem:[#allocation2 + $0x98] sm:$0xff] }
 0x1a2   : > { %1268 = vst [vmem:[%s2229_s8 + $0x48] sm:$0xff] %v1236_v39  ;;  %1270 = vst [vmem:[%s2229_s8 + $0x58] sm:$0xff] %v1238_v44  ;;  %v1213_v0 = vld [vmem:[%s2227_s4 + $0x90] sm:$0xff]  ;;  %v1214_v3 = vld [vmem:[%s2227_s4 + $0x98] sm:$0xff] }
 0x1a3   : > { %v1245_v2 = vadd.f32 %v1213_v0, %v1181_v63  ;;  %v1183_v4 = vld [vmem:[#allocation2 + $0xa0] sm:$0xff]  ;;  %1275 = vst [vmem:[%s2229_s8 + $0x80] sm:$0xff] %v1243_v61  ;;  %1276 = vst [vmem:[%s2229_s8 + $0x88] sm:$0xff] %v1244_v62  ;;  %v1246_v6 = vadd.f32 %v1214_v3, %v1182_v1  ;;  %v1184_v8 = vld [vmem:[#allocation2 + $0xa8] sm:$0xff] }
 0x1a4   : > { %v1177_v50 = vld [vmem:[#allocation2 + $0x70] sm:$0xff]  ;;  %v1215_v5 = vld [vmem:[%s2227_s4 + $0xa0] sm:$0xff]  ;;  %v1248_v11 = vadd.f32 %v1216_v9, %v1184_v8  ;;  %v1188_v19 = vld [vmem:[#allocation2 + $0xc8] sm:$0xff]  ;;  %1281 = vst [vmem:[%s2229_s8 + $0xb0] sm:$0xff] %v1249_v15 }
 0x1a5   : > { %v1175_v45 = vld [vmem:[#allocation2 + $0x60] sm:$0xff]  ;;  %v1241_v53 = vadd.f32 %v1209_v51, %v1177_v50  ;;  %v1247_v7 = vadd.f32 %v1215_v5, %v1183_v4  ;;  %1277 = vst [vmem:[%s2229_s8 + $0x90] sm:$0xff] %v1245_v2  ;;  %1278 = vst [vmem:[%s2229_s8 + $0x98] sm:$0xff] %v1246_v6  ;;  %v1189_v22 = vld [vmem:[#allocation2 + $0xd0] sm:$0xff]  ;;  %v1252_v24 = vadd.f32 %v1220_v21, %v1188_v19 }
 0x1a6   : > { %v1239_v48 = vadd.f32 %v1207_v46, %v1175_v45  ;;  %v1178_v54 = vld [vmem:[#allocation2 + $0x78] sm:$0xff]  ;;  %v1187_v17 = vld [vmem:[#allocation2 + $0xc0] sm:$0xff]  ;;  %1280 = vst [vmem:[%s2229_s8 + $0xa8] sm:$0xff] %v1248_v11  ;;  %1282 = vst [vmem:[%s2229_s8 + $0xb8] sm:$0xff] %v1250_v16  ;;  %v1253_v25 = vadd.f32 %v1221_v23, %v1189_v22 }
 0x1a7   : > { %v1176_v47 = vld [vmem:[#allocation2 + $0x68] sm:$0xff]  ;;  %v1242_v57 = vadd.f32 %v1210_v55, %v1178_v54  ;;  %1273 = vst [vmem:[%s2229_s8 + $0x70] sm:$0xff] %v1241_v53  ;;  %1279 = vst [vmem:[%s2229_s8 + $0xa0] sm:$0xff] %v1247_v7  ;;  %v1251_v20 = vadd.f32 %v1219_v18, %v1187_v17  ;;  %v1190_v26 = vld [vmem:[#allocation2 + $0xd8] sm:$0xff] }
 0x1a8   : > { %v1240_v52 = vadd.f32 %v1208_v49, %v1176_v47  ;;  %1271 = vst [vmem:[%s2229_s8 + $0x60] sm:$0xff] %v1239_v48  ;;  %v1191_v28 = vld [vmem:[#allocation2 + $0xe0] sm:$0xff]  ;;  %v1254_v29 = vadd.f32 %v1222_v27, %v1190_v26  ;;  %v1192_v31 = vld [vmem:[#allocation2 + $0xe8] sm:$0xff]  ;;  %1284 = vst [vmem:[%s2229_s8 + $0xc8] sm:$0xff] %v1252_v24 }
 0x1a9   : > { %1274 = vst [vmem:[%s2229_s8 + $0x78] sm:$0xff] %v1242_v57  ;;  %1283 = vst [vmem:[%s2229_s8 + $0xc0] sm:$0xff] %v1251_v20  ;;  %v1223_v30 = vld [vmem:[%s2227_s4 + $0xe0] sm:$0xff]  ;;  %v1224_v32 = vld [vmem:[%s2227_s4 + $0xe8] sm:$0xff] }
 0x1aa   : > { %1272 = vst [vmem:[%s2229_s8 + $0x68] sm:$0xff] %v1240_v52  ;;  %1285 = vst [vmem:[%s2229_s8 + $0xd0] sm:$0xff] %v1253_v25  ;;  %v1255_v33 = vadd.f32 %v1223_v30, %v1191_v28  ;;  %v1256_v34 = vadd.f32 %v1224_v32, %v1192_v31  ;;  %v1193_v35 = vld [vmem:[#allocation2 + $0xf0] sm:$0xff]  ;;  %v1194_v37 = vld [vmem:[#allocation2 + $0xf8] sm:$0xff] }
 0x1ab   : > { %v1225_v36 = vld [vmem:[%s2227_s4 + $0xf0] sm:$0xff]  ;;  %1286 = vst [vmem:[%s2229_s8 + $0xd8] sm:$0xff] %v1254_v29  ;;  %v1226_v39 = vld [vmem:[%s2227_s4 + $0xf8] sm:$0xff] }
 0x1ac   : > { %v1257_v38 = vadd.f32 %v1225_v36, %v1193_v35  ;;  %1287 = vst [vmem:[%s2229_s8 + $0xe0] sm:$0xff] %v1255_v33  ;;  %1288 = vst [vmem:[%s2229_s8 + $0xe8] sm:$0xff] %v1256_v34  ;;  %v1258_v40 = vadd.f32 %v1226_v39, %v1194_v37 }
 0x1ae   : > { %1289 = vst [vmem:[%s2229_s8 + $0xf0] sm:$0xff] %v1257_v38  ;;  %1290 = vst [vmem:[%s2229_s8 + $0xf8] sm:$0xff] %v1258_v40 }
 0x1af PF: > { %s2432_s15 = sld [smem:[#allocation10_spill]]  ;;  %s2433_s17 = sld [smem:[#allocation9_spill]] }
 0x1b0   : > { %s1307_s11 = sshll.u32 %s2229_s8, 4  ;;  %s2434_s9 = sld [smem:[#allocation15_spill]]  ;;  %s2324_s11 = int_to_ptr.vmem [resolvable:$true] %s1307_s11 }
 0x1b1   : > { %s2333_s28 = scalar_lea.sflag [#allocation7], %s638_s7  ;;  %s1728_s29 = scalar_lea.vmem %s2324_s11, 4096 }
 0x1b2   : > { %p1729_p10 = scmp.ne.s32.totalorder %s2324_s11, %s1728_s29  ;;  %s1873_s4 = smov [#allocation6]  }
 0x1b3   : > { %s1732_s8 = sshll.u32 %s1873_s4, 4  ;;  %s1733_s8 = int_to_ptr.vmem [resolvable:$false] %s1732_s8 }
 0x1b4   : > { %p1730_p11 = pnand %p1729_p10, %p2025_p0  ;;  %p1735_p13 = scmp.lt.s32.totalorder %s2324_s11, %s1733_s8 }
 0x1b5   : > { %s1580_s19 = smul.u32 96, %s2432_s15  ;;  %s1734_s15 = scalar_lea.vmem %s1733_s8, 8192 }
 0x1b6   : > { %p1731_p12 = pneg %p1730_p11  ;;  %p1736_p1 = scmp.lt.s32.totalorder %s1734_s15, %s1728_s29 }
 0x1b7   : > { %s1304_s0 = sadd.s32 %s2433_s17, %s1580_s19 }
 0x1b8   : > { %s1486_s3 = sshll.u32 %s1304_s0, 7  ;;  %p1737_p3 = por %p1736_p1, %p1735_p13 }
 0x1b9   : > { %s2329_s20 = scalar_lea.hbm %s2434_s9, %s1486_s3 }
 0x1ba   : > { %p1738_p2 = pnand %p1737_p3, %p1731_p12 }
 0x1bc   : > { %1741 = shalt.err (!%p1738_p2)
}
 0x1bd   : > { %s1742_s7 = scalar_lea.hbm %s2329_s20, 4096  ;;  %s1746_s0 = scalar_lea.hbm %s2434_s9, 24576 }
 0x1be   : > { %p1743_p4 = scmp.ne.s32.totalorder %s2329_s20, %s1742_s7  ;;  %p1747_p8 = scmp.lt.u32.totalorder %s2329_s20, %s2434_s9 }
 0x1bf   : > { %p1748_p9 = scmp.lt.u32.totalorder %s1746_s0, %s1742_s7  ;;  %p1750_p11 = scmp.lt.u32.totalorder %s1742_s7, %s2329_s20 }
 0x1c0   : > { %p1744_p6 = pnand %p1743_p4, %p2025_p0 }
 0x1c1   : > { %p1749_p10 = por %p1748_p9, %p1747_p8 }
 0x1c2   : > { %p1745_p7 = pneg %p1744_p6 }
 0x1c3   : > { %p1751_p12 = por %p1750_p11, %p1749_p10 }
 0x1c5   : > { %p1752_p13 = pnand %p1751_p12, %p1745_p7 }
 0x1c7   : > { %1755 = shalt.err (!%p1752_p13)
}
 0x1c8   : > { %s1874_s30 = smov 128   ;;  %s1875_s29 = smov 384  }
 0x1c9   : > { %s1876_s4 = smov 8  }
 0x1ca   : > { %1581 = dma.vmem_to_hbm [thread:$0]  (%p2025_p0), %s2324_s11, 4096, %s2329_s20, %s2333_s28, %s1874_s30, %s1875_s29, %s1876_s4  }
 0x1cb PF: > { %p1587_p1 = scmp.ge.s32.totalorder %s1870_s25, 2  ;;  %s1322_s8 = sand.u32 1, %s1818_s12  }
 0x1cc   : > { %s1323_s15 = scalar_lea.sflag [#allocation7], %s1322_s8 }
 0x1cd   : > { %p1584_p3 = pnand %p1587_p1, %p2033_p5 }
 0x1cf   : > { %1813 = dma.done.wait (!%p1584_p3), %s1323_s15, 4096  }
 0x1d0   : > { %1815 = vsyncadd (!%p1584_p3), %s1323_s15, 4294963200  ;;  %s16_s25 = sadd.s32 1, %s1870_s25   ;;  %s2436_s6 = sld [smem:[#allocation11_spill]] }
 0x1d1   : > { %p2362_p2 = scmp.ge.s32.totalorder %s16_s25, 20   ;;  %s2437_s26 = sld [smem:[#allocation12_spill]] }
 0x1d2   : > { %s2438_s11 = sld [smem:[#allocation13_spill]]  ;;  %s2439_s12 = smov %s1822_s13 }
 0x1d3   : > { %s2440_s13 = smov %s1826_s14  ;;  %s2441_s14 = smov %s2023_s21 }
 0x1d4   : > { %s2442_s15 = smov %s1834_s16  ;;  %s2443_s16 = smov %s2005_s27 }
 0x1d5   : > { %s2444_s17 = smov %s1842_s18  ;;  %s2445_s18 = smov %s2020_s10 }
 0x1d6   : > { %s2446_s19 = smov %s1858_s22  ;;  %s2447_s20 = smov %s1862_s23 }
 0x1d7   : > { %s2448_s21 = smov %s1866_s24  ;;  %s2449_s22 = smov %s2436_s6 }
 0x1d8   : > { %s2450_s23 = smov %s2437_s26  ;;  %s2451_s24 = smov %s2438_s11 }
 0x1d9   :  { %15 = sbr.rel (!%p2362_p2) target bundleno = 11 (0xb), region = 216 }
 0x1e0   :  { %1328 = vsyncpa [#allocation7], 1 }
 0x1e1   :  { %1330 = vsyncpa [#allocation7 + $0x1], 1 }

</bundles_post_ra>
